<compile_context>
chip_gen: v7x
topology: tpu7x:2x2x1
jax: 0.10.0
libtpu: 0.0.40
codegen_flags: <defaults>
</compile_context>

<pallas_src>
import math
import functools

import jax
import jax.numpy as jnp
from jax import lax
from jax.experimental import pallas as pl
from jax.experimental.pallas import tpu as pltpu


_LANE = 128
_SUBLANE = 8


def _round_up(x, m):
    return ((x + m - 1) // m) * m


def _vmem_capacity_bytes():
    """Trace-time query of per-core VMEM; conservative fallback if unavailable."""
    try:
        info = pltpu.get_tpu_info()
        cap = getattr(info, "vmem_capacity_bytes", None)
        if cap:
            return int(cap)
    except Exception:
        pass
    return 64 * 2**20  # conservative (v7x per-TC VMEM)


def _const_spec(shape):
    """BlockSpec for a grid-invariant (resident) operand, single-buffered."""
    idx = lambda i: (0,) * len(shape)
    try:
        return pl.BlockSpec(shape, idx, pipeline_mode=pl.Buffered(1))
    except Exception:
        # Older Pallas without pipeline_mode: fall back to default buffering.
        return pl.BlockSpec(shape, idx)


def _mlp_kernel(x_ref, w1_ref, b1_ref, w2_ref, b2_ref, o_ref):
    # x_ref: (tm, Cin_p); w1_ref: (Cin_p, H_p) bf16; b1_ref: (1, H_p) f32
    # w2_ref: (H_p, Cout_p) bf16; b2_ref: (1, Cout_p) f32; o_ref: (tm, Cout_p)
    x = x_ref[...].astype(jnp.bfloat16)

    # fc1: bf16 MXU inputs, f32 accumulate, f32 bias add.
    h = jnp.dot(x, w1_ref[...], preferred_element_type=jnp.float32) + b1_ref[...]

    # Exact GELU (erf form, matches PyTorch nn.GELU default), kept in f32.
    # NOTE: rows past M in the ragged last tile hold unspecified data; they are
    # processed here but never stored to valid output rows (rows independent).
    h = 0.5 * h * (1.0 + lax.erf(h * (1.0 / math.sqrt(2.0))))

    # Dropout(p=0.0) is identity -> skipped.
    # TODO(synk): non-zero dropout would need pltpu.prng_seed/prng_random_bits.

    # fc2: cast activation to bf16 only at the MXU boundary.
    o = jnp.dot(h.astype(jnp.bfloat16), w2_ref[...],
                preferred_element_type=jnp.float32) + b2_ref[...]
    o_ref[...] = o.astype(o_ref.dtype)


def prepare_mlp_params(w1, b1, w2, b2):
    """One-time parameter preparation (hoisted out of the forward pass).

    Pads channel dims to lane multiples (128) and casts weights to bf16 for
    the MXU.  Zero padding is exact for this MLP: GELU(0)==0 and padded weight
    rows/cols are zero.
    """
    Cin, H = w1.shape
    Cout = w2.shape[1]
    Cin_p, H_p, Cout_p = (_round_up(c, _LANE) for c in (Cin, H, Cout))
    w1p = jnp.pad(w1, ((0, Cin_p - Cin), (0, H_p - H))).astype(jnp.bfloat16)
    w2p = jnp.pad(w2, ((0, H_p - H), (0, Cout_p - Cout))).astype(jnp.bfloat16)
    b1p = jnp.pad(b1, (0, H_p - H)).reshape(1, H_p).astype(jnp.float32)
    b2p = jnp.pad(b2, (0, Cout_p - Cout)).reshape(1, Cout_p).astype(jnp.float32)
    return w1p, b1p, w2p, b2p


@functools.partial(jax.jit, static_argnames=("out_channels",))
def mlp_pallas(x, w1p, b1p, w2p, b2p, *, out_channels):
    """x: (B, N, Cin), prepared params from prepare_mlp_params -> (B, N, Cout)."""
    B, N, Cin = x.shape
    Cin_p, H_p = w1p.shape
    Cout_p = w2p.shape[1]
    M = B * N

    x2 = x.reshape(M, Cin)
    if Cin_p != Cin:
        # Lane-dense channel padding only when needed (no row padding).
        x2 = jnp.pad(x2, ((0, 0), (0, Cin_p - Cin)))

    # ---- generation-aware VMEM budget and row-tile selection ----
    cap = _vmem_capacity_bytes()
    if cap >= 128 * 2**20:            # v5e / v6e: 128 MiB physical VMEM
        budget = 100 * 2**20
        tm_desired = 512
    else:                              # v7x: 64 MiB per TC; leave compiler headroom
        budget = min(cap, 64 * 2**20) - 8 * 2**20
        tm_desired = 256

    itm = x2.dtype.itemsize
    fixed = ((Cin_p * H_p + H_p * Cout_p) * 2      # single-buffered bf16 weights
             + (H_p + Cout_p) * 4                  # biases (f32)
             + 4 * 2**20)                          # fixed compiler-scratch headroom
    per_row = (2 * Cin_p * itm                     # x tile, double-buffered
               + 2 * Cout_p * itm                  # out tile, double-buffered
               + 2 * H_p * 4)                      # f32 h intermediate + temps
    tm_fit = max(_SUBLANE, ((budget - fixed) // per_row) // _SUBLANE * _SUBLANE)
    # Aim for >= 2 grid steps when possible so both v7x TensorCores get work.
    tm_half = _round_up(pl.cdiv(M, 2), _SUBLANE) if M > _SUBLANE else _SUBLANE
    tm_eff = int(max(_SUBLANE, min(tm_desired, tm_fit, tm_half)))

    grid = (pl.cdiv(M, tm_eff),)      # ragged last tile masked by Pallas
    vmem_limit = int(min(max(fixed + tm_eff * per_row, 16 * 2**20),
                         max(budget, 16 * 2**20)))
    # TODO(synk): for very large Cin/H where resident bf16 weights exceed the
    # v7x budget, tile the contraction (K-axis grid + f32 accumulator) instead.

    out2 = pl.pallas_call(
        _mlp_kernel,
        out_shape=jax.ShapeDtypeStruct((M, Cout_p), x.dtype),
        grid_spec=pltpu.PrefetchScalarGridSpec(
            num_scalar_prefetch=0,
            grid=grid,
            in_specs=[
                pl.BlockSpec((tm_eff, Cin_p), lambda i: (i, 0)),  # x rows tile
                _const_spec((Cin_p, H_p)),                        # W1 (resident)
                _const_spec((1, H_p)),                            # b1
                _const_spec((H_p, Cout_p)),                       # W2 (resident)
                _const_spec((1, Cout_p)),                         # b2
            ],
            out_specs=pl.BlockSpec((tm_eff, Cout_p), lambda i: (i, 0)),
        ),
        compiler_params=pltpu.CompilerParams(
            dimension_semantics=("parallel",),
            vmem_limit_bytes=vmem_limit,
        ),
    )(x2, w1p, b1p, w2p, b2p)

    out = out2 if Cout_p == out_channels else out2[:, :out_channels]
    return out.reshape(B, N, out_channels)


def _reference_mlp(x, w1, b1, w2, b2):
    h = jnp.einsum("bnc,ch->bnh", x, w1) + b1
    h = 0.5 * h * (1.0 + lax.erf(h / jnp.sqrt(2.0).astype(h.dtype)))
    return jnp.einsum("bnh,ho->bno", h, w2) + b2


if __name__ == "__main__":
    # Small shapes consistent with the module: tokens of dim in_channels.
    B, N = 2, 8
    in_channels = 32
    hidden_channels = 64
    out_channels = 32

    key = jax.random.PRNGKey(0)
    kx, k1, k2, k3, k4 = jax.random.split(key, 5)

    x = jax.random.normal(kx, (B, N, in_channels), dtype=jnp.float32)

    # Deterministic parameter init (shapes from nn.Linear in __init__).
    w1 = jax.random.normal(k1, (in_channels, hidden_channels), jnp.float32) * 0.02
    b1 = jax.random.normal(k2, (hidden_channels,), jnp.float32) * 0.02
    w2 = jax.random.normal(k3, (hidden_channels, out_channels), jnp.float32) * 0.02
    b2 = jax.random.normal(k4, (out_channels,), jnp.float32) * 0.02

    # One-time parameter preparation (pad + bf16 cast hoisted out of forward).
    w1p, b1p, w2p, b2p = prepare_mlp_params(w1, b1, w2, b2)

    out = mlp_pallas(x, w1p, b1p, w2p, b2p, out_channels=out_channels)
    out = jax.block_until_ready(out)

    ref = _reference_mlp(x, w1, b1, w2, b2)
    assert out.shape == (B, N, out_channels)
    # Tolerance loosened for bf16 MXU inputs (f32 accumulation + f32 GELU).
    assert jnp.allclose(out, ref, atol=1e-2, rtol=1e-2), "mismatch vs reference"

    print("KERNEL_OK")
</pallas_src>

<mosaic_0001>
module attributes {stable_mosaic.version = 11 : i64} {
  func.func @_mlp_kernel(%arg0: i32, %arg1: memref<8x128xf32, #tpu.memory_space<vmem>>, %arg2: memref<128x128xbf16, #tpu.memory_space<vmem>>, %arg3: memref<1x128xf32, #tpu.memory_space<vmem>>, %arg4: memref<128x128xbf16, #tpu.memory_space<vmem>>, %arg5: memref<1x128xf32, #tpu.memory_space<vmem>>, %arg6: memref<8x128xf32, #tpu.memory_space<vmem>>) attributes {dimension_semantics = [#tpu.dimension_semantics<parallel>], iteration_bounds = array<i64: 2>, scalar_prefetch = 0 : i64, scratch_operands = 0 : i64, tpu.core_type = #tpu.core_type<tc>, window_params = [{transform_indices = @transform_0, window_bounds = array<i64: 8, 128>}, {pipeline_mode = #tpu.pipeline_mode<synchronous>, transform_indices = @transform_1, window_bounds = array<i64: 128, 128>}, {pipeline_mode = #tpu.pipeline_mode<synchronous>, transform_indices = @transform_2, window_bounds = array<i64: 1, 128>}, {pipeline_mode = #tpu.pipeline_mode<synchronous>, transform_indices = @transform_3, window_bounds = array<i64: 128, 128>}, {pipeline_mode = #tpu.pipeline_mode<synchronous>, transform_indices = @transform_4, window_bounds = array<i64: 1, 128>}, {transform_indices = @transform_5, window_bounds = array<i64: 8, 128>}]} {
    %c0 = arith.constant 0 : index
    %c0_0 = arith.constant 0 : index
    %0 = vector.load %arg1[%c0, %c0_0] : memref<8x128xf32, #tpu.memory_space<vmem>>, vector<8x128xf32>
    %1 = arith.truncf %0 : vector<8x128xf32> to vector<8x128xbf16>
    %c0_1 = arith.constant 0 : index
    %c0_2 = arith.constant 0 : index
    %2 = vector.load %arg2[%c0_1, %c0_2] : memref<128x128xbf16, #tpu.memory_space<vmem>>, vector<128x128xbf16>
    %cst = arith.constant dense<0.000000e+00> : vector<8x128xf32>
    %3 = tpu.matmul %1, %2, %cst {dimension_numbers = #tpu.dot_dimension_numbers<[1], [0], [0], [1], [0, 0, 1, 1], [], []>} : vector<8x128xbf16>, vector<128x128xbf16>, vector<8x128xf32> -> vector<8x128xf32>
    %c0_3 = arith.constant 0 : index
    %c0_4 = arith.constant 0 : index
    %4 = vector.load %arg3[%c0_3, %c0_4] : memref<1x128xf32, #tpu.memory_space<vmem>>, vector<1x128xf32>
    %5 = vector.broadcast %4 : vector<1x128xf32> to vector<8x128xf32>
    %6 = arith.addf %3, %5 : vector<8x128xf32>
    %cst_5 = arith.constant 5.000000e-01 : f32
    %7 = vector.broadcast %cst_5 : f32 to vector<8x128xf32>
    %8 = arith.mulf %7, %6 : vector<8x128xf32>
    %cst_6 = arith.constant 0.707106769 : f32
    %9 = vector.broadcast %cst_6 : f32 to vector<8x128xf32>
    %10 = arith.mulf %6, %9 : vector<8x128xf32>
    %11 = math.erf %10 : vector<8x128xf32>
    %cst_7 = arith.constant 1.000000e+00 : f32
    %12 = vector.broadcast %cst_7 : f32 to vector<8x128xf32>
    %13 = arith.addf %12, %11 : vector<8x128xf32>
    %14 = arith.mulf %8, %13 : vector<8x128xf32>
    %15 = arith.truncf %14 : vector<8x128xf32> to vector<8x128xbf16>
    %c0_8 = arith.constant 0 : index
    %c0_9 = arith.constant 0 : index
    %16 = vector.load %arg4[%c0_8, %c0_9] : memref<128x128xbf16, #tpu.memory_space<vmem>>, vector<128x128xbf16>
    %cst_10 = arith.constant dense<0.000000e+00> : vector<8x128xf32>
    %17 = tpu.matmul %15, %16, %cst_10 {dimension_numbers = #tpu.dot_dimension_numbers<[1], [0], [0], [1], [0, 0, 1, 1], [], []>} : vector<8x128xbf16>, vector<128x128xbf16>, vector<8x128xf32> -> vector<8x128xf32>
    %c0_11 = arith.constant 0 : index
    %c0_12 = arith.constant 0 : index
    %18 = vector.load %arg5[%c0_11, %c0_12] : memref<1x128xf32, #tpu.memory_space<vmem>>, vector<1x128xf32>
    %19 = vector.broadcast %18 : vector<1x128xf32> to vector<8x128xf32>
    %20 = arith.addf %17, %19 : vector<8x128xf32>
    %c0_13 = arith.constant 0 : index
    %c0_14 = arith.constant 0 : index
    %21 = vector.load %arg6[%c0_13, %c0_14] : memref<8x128xf32, #tpu.memory_space<vmem>>, vector<8x128xf32>
    tpu.vector_store %arg6[%c0_13, %c0_14], %20 {strides = array<i32>} : memref<8x128xf32, #tpu.memory_space<vmem>>, vector<8x128xf32>,
    return
  }
  func.func @transform_0(%arg0: i32) -> (i32, i32) {
    %c0_i32 = arith.constant 0 : i32
    %c0_i32_0 = arith.constant 0 : i32
    return %arg0, %c0_i32 : i32, i32
  }
  func.func @transform_1(%arg0: i32) -> (i32, i32) {
    %c0_i32 = arith.constant 0 : i32
    %c0_i32_0 = arith.constant 0 : i32
    %c0_i32_1 = arith.constant 0 : i32
    return %c0_i32, %c0_i32_0 : i32, i32
  }
  func.func @transform_2(%arg0: i32) -> (i32, i32) {
    %c0_i32 = arith.constant 0 : i32
    %c0_i32_0 = arith.constant 0 : i32
    %c0_i32_1 = arith.constant 0 : i32
    return %c0_i32, %c0_i32_0 : i32, i32
  }
  func.func @transform_3(%arg0: i32) -> (i32, i32) {
    %c0_i32 = arith.constant 0 : i32
    %c0_i32_0 = arith.constant 0 : i32
    %c0_i32_1 = arith.constant 0 : i32
    return %c0_i32, %c0_i32_0 : i32, i32
  }
  func.func @transform_4(%arg0: i32) -> (i32, i32) {
    %c0_i32 = arith.constant 0 : i32
    %c0_i32_0 = arith.constant 0 : i32
    %c0_i32_1 = arith.constant 0 : i32
    return %c0_i32, %c0_i32_0 : i32, i32
  }
  func.func @transform_5(%arg0: i32) -> (i32, i32) {
    %c0_i32 = arith.constant 0 : i32
    %c0_i32_0 = arith.constant 0 : i32
    return %arg0, %c0_i32 : i32, i32
  }
}

</mosaic_0001>

<bundles_post_ra>
// kernel: mlp_pallas.1
= control target key start
LH: loop header
LB: loop body
LE: loop exit
PB: predicated region body
PF: predicated region fallthrough
CT: control target
= control target key end

     0   :  { %10 = vsyncpa [#allocation3], 0  ;;  %s911_s0 = inlined_call_operand.vmem [shape: f32[16,128], index: 0, kind: input, shape index: {}]   ;;  %s912_s1 = inlined_call_operand.hbm [shape: bf16[128,128], index: 1, kind: input, shape index: {}]   ;;  %s913_s2 = inlined_call_operand.vmem [shape: f32[1,128], index: 2, kind: input, shape index: {}]   ;;  %s914_s3 = inlined_call_operand.hbm [shape: bf16[128,128], index: 3, kind: input, shape index: {}]   ;;  %s915_s4 = inlined_call_operand.vmem [shape: f32[1,128], index: 4, kind: input, shape index: {}]   ;;  %s916_s5 = inlined_call_operand.vmem [shape: f32[16,128], index: 5, kind: output, shape index: {}]  }
   0x1   :  { %11 = vsyncpa [#allocation5], 0  ;;  %s805_s18 = smov 0  }
   0x2 LB: > { %s811_s19 = sadd.s32 4294967295, %s767_s18   ;;  %p559_p0 = scmp.ge.s32.totalorder %s767_s18, 1  ;;  %s767_s18 = sphi %s805_s18, %s17_s18  }
   0x3   : > { %p158_p1 = scmp.lt.s32.totalorder %s767_s18, 3  ;;  %s769_s20 = smov [#allocation2]  }
   0x4   : > { %s170_s21 = sshll.u32 %s769_s20, 4  ;;  %p917_p3 = scmp.eq.s32.totalorder %s811_s19, 0  ;;  %s171_s21 = int_to_ptr.vmem [resolvable:$true] %s170_s21 }
   0x5   : > { %p815_p2 = pnand %p559_p0, %p158_p1  ;;  %s770_s23 = smov [#allocation4]  }
   0x6   : > { %s186_s24 = sshll.u32 %s770_s23, 4  ;;  %s697_s28 = scalar_lea.hbm %s912_s1, 1024  ;;  %s828_s24 = int_to_ptr.vmem [resolvable:$true] %s186_s24 }
   0x7   : > { %s919_s22 = scalar_select %p815_p2, 1, 0 }
   0x8   : > { %p654_p4 = pneg %p815_p2  ;;  %p698_p6 = scmp.ne.s32.totalorder %s912_s1, %s697_s28 }
   0x9   : > { %p704_p10 = scmp.lt.u32.totalorder %s697_s28, %s912_s1 }
   0xa   : > { %p824_p5 = pnand %p917_p3, %p654_p4 }
   0xc   : > { %p699_p7 = pneg %p824_p5 }
   0xe   : > { %p700_p8 = pnand %p699_p7, %p698_p6 }
  0x10   : > { %p701_p9 = pneg %p700_p8 }
  0x12   : > { %p706_p11 = pnand %p704_p10, %p701_p9 }
  0x14   : > { %709 = shalt.err (!%p706_p11)
}
  0x15   : > { %s710_s8 = scalar_lea.vmem %s171_s21, 1024  ;;  %p718_p1 = scmp.lt.s32.totalorder %s171_s21, %s171_s21 }
  0x16   : > { %p711_p12 = scmp.ne.s32.totalorder %s171_s21, %s710_s8  ;;  %p719_p4 = scmp.lt.s32.totalorder %s710_s8, %s710_s8 }
  0x18   : > { %p713_p13 = pnand %p711_p12, %p699_p7  ;;  %p720_p3 = por %p719_p4, %p718_p1 }
  0x1a   : > { %p714_p0 = pneg %p713_p13 }
  0x1c   : > { %p721_p2 = pnand %p720_p3, %p714_p0 }
  0x1e   : > { %724 = shalt.err (!%p721_p2)
}
  0x1f   : > { %s771_s9 = smov 64   ;;  %s772_s10 = smov 4  }
  0x20   : > { %657 = dma.hbm_to_vmem [thread:$0]  (!%p824_p5), %s912_s1, 1024, %s171_s21, [#allocation3], %s771_s9, %s771_s9, %s772_s10  }
  0x21   : > { %s725_s15 = scalar_lea.hbm %s914_s3, 1024 }
  0x22   : > { %p726_p6 = scmp.ne.s32.totalorder %s914_s3, %s725_s15  ;;  %p732_p8 = scmp.lt.u32.totalorder %s725_s15, %s914_s3 }
  0x24   : > { %p728_p2 = pnand %p726_p6, %p699_p7 }
  0x26   : > { %p729_p3 = pneg %p728_p2 }
  0x28   : > { %p734_p9 = pnand %p732_p8, %p729_p3 }
  0x2a   : > { %737 = shalt.err (!%p734_p9)
}
  0x2b   : > { %s738_s21 = scalar_lea.vmem %s828_s24, 1024  ;;  %p746_p13 = scmp.lt.s32.totalorder %s828_s24, %s828_s24 }
  0x2c   : > { %p739_p10 = scmp.ne.s32.totalorder %s828_s24, %s738_s21  ;;  %p747_p0 = scmp.lt.s32.totalorder %s738_s21, %s738_s21 }
  0x2e   : > { %p741_p11 = pnand %p739_p10, %p699_p7  ;;  %p748_p1 = por %p747_p0, %p746_p13 }
  0x30   : > { %p742_p12 = pneg %p741_p11 }
  0x32   : > { %p749_p4 = pnand %p748_p1, %p742_p12 }
  0x34   : > { %752 = shalt.err (!%p749_p4)
}
  0x35   : > { %660 = dma.hbm_to_vmem [thread:$0]  (!%p824_p5), %s914_s3, 1024, %s828_s24, [#allocation5], %s771_s9, %s771_s9, %s772_s10  }
  0x36   : > { %p921_p6 = scmp.ne.s32.totalorder %s919_s22, 0 }
  0x37   : > { %p922_p2 = scmp.eq.s32.totalorder (!%p921_p6), %s811_s19, 0 }
  0x38   : > { %212 = sbr.rel (%p921_p6) target bundleno = 549 (0x225), region = 40 }
  0x3f   : > { %758 = dma.done.wait (%p922_p2), [#allocation3], 1024   ;;  %p923_p7 = pmov %p922_p2 }
  0x40   : > { %p924_p3 = pmov %p922_p2 }
  0x41   : > { %760 = vsyncadd (%p923_p7), [#allocation3], 4294966272 }
  0x42   : > { %762 = dma.done.wait (%p924_p3), [#allocation5], 1024   ;;  %p925_p8 = pmov %p922_p2 }
  0x43   : > { %v773_v0 = vmov 0.0   ;;  %vm774_vm0 = vmmov 0   ;;  %v679_v1 = vld [vmem:[#allocation2] sm:$0xff]   ;;  %v680_v2 = vld [vmem:[#allocation2 + $0x8] sm:$0xff]   ;;  %v681_v3 = vld [vmem:[#allocation2 + $0x10] sm:$0xff]   ;;  %p242_p5 = scmp.lt.s32.totalorder %s811_s19, 1 }
  0x44   : > { %764 = vsyncadd (%p925_p8), [#allocation5], 4294966272  ;;  %606 = vmatprep.subr.bf16.mxu0 %v773_v0  ;;  %622 = vmatprep.mubr.msk.bf16.mxu0 %vm774_vm0, %v773_v0  ;;  %v687_v4 = vld [vmem:[#allocation4] sm:$0xff]   ;;  %v682_v5 = vld [vmem:[#allocation2 + $0x18] sm:$0xff]  }
  0x45   : > { %626 = vmatprep.subr.bf16.mxu1 %v773_v0  ;;  %642 = vmatprep.mubr.msk.bf16.mxu1 %vm774_vm0, %v773_v0  ;;  %v688_v6 = vld [vmem:[#allocation4 + $0x8] sm:$0xff]   ;;  %v683_v7 = vld [vmem:[#allocation2 + $0x20] sm:$0xff]   ;;  %v689_v8 = vld [vmem:[#allocation4 + $0x10] sm:$0xff]   ;;  %s927_s19 = smov (!%p242_p5, %s811_s19), 1 }
  0x46   : > { %607 = vmatpush3.bf16.msra.mxu0 %v679_v1  ;;  %627 = vmatpush3.bf16.msra.mxu1 %v687_v4  ;;  %v684_v9 = vld [vmem:[#allocation2 + $0x28] sm:$0xff]   ;;  %s566_s22 = sshll.u32 %s927_s19, 3  ;;  %v685_v10 = vld [vmem:[#allocation2 + $0x30] sm:$0xff]   ;;  %v686_v11 = vld [vmem:[#allocation2 + $0x38] sm:$0xff]  }
  0x47   : > { %608 = vmatprep.subr.bf16.mxu0 %v773_v0  ;;  %628 = vmatprep.subr.bf16.mxu1 %v773_v0  ;;  %s245_s28 = scalar_lea.vmem %s911_s0, %s566_s22  ;;  %v690_v14 = vld [vmem:[#allocation4 + $0x18] sm:$0xff]   ;;  %v691_v15 = vld [vmem:[#allocation4 + $0x20] sm:$0xff]   ;;  %v692_v16 = vld [vmem:[#allocation4 + $0x28] sm:$0xff]   ;;  %s249_s10 = scalar_lea.vmem %s916_s5, %s566_s22 }
  0x48   : > { %v251_v12 = vld [vmem:[%s245_s28] sm:$0xff]  ;;  %v693_v17 = vld [vmem:[#allocation4 + $0x30] sm:$0xff]   ;;  %v694_v18 = vld [vmem:[#allocation4 + $0x38] sm:$0xff]  }
  0x49   : > { %v252_v13 = vpack.c.bf16 %v251_v12, %v251_v12  ;;  %v568_v19 = vld [vmem:[%s913_s2] ss:$0 sm:$0xff] }
  0x4a   : > { %609 = vmatpush3.bf16.msra.mxu0 %v680_v2  ;;  %629 = vmatpush3.bf16.msra.mxu1 %v688_v6  ;;  %v577_v31 = vld [vmem:[%s915_s4] ss:$0 sm:$0xff] }
  0x4b   : > { %610 = vmatprep.subr.bf16.mxu0 %v773_v0  ;;  %630 = vmatprep.subr.bf16.mxu1 %v773_v0 }
  0x4e   : > { %611 = vmatpush3.bf16.msra.mxu0 %v681_v3  ;;  %631 = vmatpush3.bf16.msra.mxu1 %v689_v8 }
  0x4f   : > { %612 = vmatprep.subr.bf16.mxu0 %v773_v0  ;;  %632 = vmatprep.subr.bf16.mxu1 %v773_v0 }
  0x52   : > { %613 = vmatpush3.bf16.msra.mxu0 %v682_v5  ;;  %633 = vmatpush3.bf16.msra.mxu1 %v690_v14 }
  0x53   : > { %614 = vmatprep.subr.bf16.mxu0 %v773_v0  ;;  %634 = vmatprep.subr.bf16.mxu1 %v773_v0 }
  0x56   : > { %615 = vmatpush3.bf16.msra.mxu0 %v683_v7  ;;  %635 = vmatpush3.bf16.msra.mxu1 %v691_v15 }
  0x57   : > { %616 = vmatprep.subr.bf16.mxu0 %v773_v0  ;;  %636 = vmatprep.subr.bf16.mxu1 %v773_v0 }
  0x5a   : > { %617 = vmatpush3.bf16.msra.mxu0 %v684_v9  ;;  %637 = vmatpush3.bf16.msra.mxu1 %v692_v16 }
  0x5b   : > { %618 = vmatprep.subr.bf16.mxu0 %v773_v0  ;;  %638 = vmatprep.subr.bf16.mxu1 %v773_v0 }
  0x5e   : > { %619 = vmatpush3.bf16.msra.mxu0 %v685_v10  ;;  %639 = vmatpush3.bf16.msra.mxu1 %v693_v17 }
  0x5f   : > { %620 = vmatprep.subr.bf16.mxu0 %v773_v0  ;;  %640 = vmatprep.subr.bf16.mxu1 %v773_v0 }
  0x62   : > { %621 = vmatpush3.bf16.msra.mxu0 %v686_v11  ;;  %641 = vmatpush3.bf16.msra.mxu1 %v694_v18 }
  0x65   : > { %623 = vmatmul.mubr.bf16.vlgmr.msra.gmra.mrb[0].mxu0 %v252_v13 }
 0x138   : > { %v358_v20 = vpop.f32.mrb[0].mxu0 }
 0x139   : > { %v359_v21 = vadd.f32 %v568_v19, %v358_v20  ;;  %v624_v22 = vpop.f32.mrb[1].mxu0 }
 0x13a   : > { %v361_v23 = vpop.f32.mrb[2].mxu0 }
 0x13b   : > { %v365_v24 = vmul.f32 0.70710677, %v359_v21  ;;  %v625_v25 = vpop.f32.mrb[3].mxu0  ;;  %v364_v27 = vmul.f32 0.5, %v359_v21 }
 0x13d   : > { %695 = verf.f32 %v365_v24 }
 0x147   : > { %v696_v26 = vpop.eup %695 }
 0x148   : > { %v367_v28 = vadd.f32 1.0, %v696_v26 }
 0x14a   : > { %v368_v29 = vmul.f32 %v367_v28, %v364_v27 }
 0x14c   : > { %v369_v30 = vpack.c.bf16 %v368_v29, %v368_v29 }
 0x14e   : > { %643 = vmatmul.mubr.bf16.vlgmr.msra.gmra.mrb[0].mxu1 %v369_v30 }
 0x221   : > { %v475_v32 = vpop.f32.mrb[0].mxu1 }
 0x222   : > { %v476_v33 = vadd.f32 %v577_v31, %v475_v32  ;;  %v644_v34 = vpop.f32.mrb[1].mxu1 }
 0x223   : > { %v478_v35 = vpop.f32.mrb[2].mxu1 }
 0x224   : > { %481 = vst [vmem:[%s249_s10] sm:$0xff] %v476_v33  ;;  %v645_v36 = vpop.f32.mrb[3].mxu1 }
 0x225 PF: > { %s17_s18 = sadd.s32 1, %s767_s18  }
 0x226   : > { %p14_p9 = scmp.ge.s32.totalorder %s17_s18, 4  }
 0x228   :  { %16 = sbr.rel (!%p14_p9) target bundleno = 2 (0x2), region = 79 }
 0x22f   :  { %501 = vsyncpa [#allocation3], 1 }
 0x230   :  { %503 = vsyncpa [#allocation3 + $0x1], 1 }
 0x231   :  { %504 = vsyncpa [#allocation5], 1 }

</bundles_post_ra>
